<compile_context>
chip_gen: v7x
topology: tpu7x:2x2x1
jax: 0.10.0
libtpu: 0.0.40
codegen_flags: <defaults>
</compile_context>

<pallas_src>
import jax
import jax.numpy as jnp
from jax.experimental import pallas as pl
from jax.experimental.pallas import tpu as pltpu


def _round_up(n, m):
    return ((n + m - 1) // m) * m


def _vmem_limit_bytes():
    """Generation-aware VMEM budget: ~85% of physical (64 MiB v7x, 128 MiB v5e/v6e)."""
    cap = 64 * 1024 * 1024  # conservative fallback (v7x)
    try:
        info = pltpu.get_tpu_info()
        cap = int(getattr(info, "vmem_capacity_bytes", cap) or cap)
    except Exception:
        pass
    return int(cap * 0.85)


def _make_kernel(num_hidden):
    """num_hidden is a compile-time constant baked into the kernel (static unroll)."""

    def kernel(*refs):
        if num_hidden > 0:
            x_ref, w1_ref, b1_ref, wh_ref, bh_ref, wo_ref, bo_ref, o_ref = refs
        else:
            x_ref, w1_ref, b1_ref, wo_ref, bo_ref, o_ref = refs
            wh_ref = bh_ref = None

        # fc1 + ReLU (x already bf16 from the wrapper; f32 MXU accumulation)
        h = jnp.dot(x_ref[...], w1_ref[...],
                    preferred_element_type=jnp.float32) + b1_ref[...]
        h = jnp.maximum(h, 0.0)

        # hidden layers (weights resident in VMEM, single-buffered)
        for i in range(num_hidden):
            h = jnp.dot(h.astype(jnp.bfloat16), wh_ref[i],
                        preferred_element_type=jnp.float32) + bh_ref[i]
            h = jnp.maximum(h, 0.0)

        # output layer; padded logit columns are masked for free via -1e30 in bo
        logits = jnp.dot(h.astype(jnp.bfloat16), wo_ref[...],
                         preferred_element_type=jnp.float32) + bo_ref[...]

        # softmax over dim=1 (last axis); exact normalization keeps row sums tight
        m = jnp.max(logits, axis=-1, keepdims=True)
        e = jnp.exp(logits - m)
        s = jnp.sum(e, axis=-1, keepdims=True)
        o_ref[...] = (e / s).astype(o_ref.dtype)

    return kernel


def _weight_spec(shape, index_map, mode):
    if mode is None:
        return pl.BlockSpec(shape, index_map)
    return pl.BlockSpec(shape, index_map, pipeline_mode=mode)


def vector_predictor_forward(x, params, *, tile_b=512):
    """x: [B, input_size] float32. params: dict of [in,out]-layout weights/biases."""
    w1, b1 = params["w1"], params["b1"]          # [IN, H], [1, H]
    wh, bh = params["wh"], params["bh"]          # [L, H, H], [L, 1, H]
    wo, bo = params["wo"], params["bo"]          # [H, O], [1, O]

    B, IN = x.shape
    H = w1.shape[1]
    OUT = wo.shape[1]
    L = wh.shape[0]

    # lane-dense feature padding (zeros are exact through the Linear+ReLU chain)
    IN_p = _round_up(IN, 128)
    H_p = _round_up(H, 128)
    OUT_p = _round_up(OUT, 128)

    vmem_limit = _vmem_limit_bytes()

    # ---- batch tile selection ---------------------------------------------
    tile_b = max(8, min(_round_up(tile_b, 8), _round_up(B, 8)))

    weight_bytes = ((IN_p * H_p + L * H_p * H_p + H_p * OUT_p) * 2   # bf16 weights
                    + (H_p + L * H_p + OUT_p) * 4)                   # f32 biases

    def footprint(tb):
        act = 2 * tb * IN_p * 2      # bf16 x tile, double-buffered
        out_b = 2 * tb * OUT_p * 4   # f32 out tile, double-buffered
        interm = 4 * tb * H_p * 4    # f32/bf16 hidden intermediates (headroom)
        return weight_bytes + act + out_b + interm

    # shrink tile_b until the budget fits (keeps weights resident as long as possible)
    while tile_b > 8 and footprint(tile_b) > int(vmem_limit * 0.9):
        tile_b = max(8, _round_up(tile_b // 2, 8))

    # v7x megacore: prefer >=2 grid steps when the batch allows it
    while tile_b > 256 and _round_up(B, tile_b) // tile_b < 2:
        tile_b = max(256, _round_up(tile_b // 2, 8))

    B_p = _round_up(B, tile_b)

    f32, bf16 = jnp.float32, jnp.bfloat16

    # x: bf16 once in the wrapper (halves per-step activation DMA); pad only if needed
    if B_p == B and IN_p == IN:
        x_p = x.astype(bf16)
    else:
        x_p = jnp.zeros((B_p, IN_p), bf16).at[:B, :IN].set(x.astype(bf16))

    w1_p = jnp.zeros((IN_p, H_p), bf16).at[:IN, :H].set(w1.astype(bf16))
    b1_p = jnp.zeros((1, H_p), f32).at[:, :H].set(b1.astype(f32))
    wo_p = jnp.zeros((H_p, OUT_p), bf16).at[:H, :OUT].set(wo.astype(bf16))
    # padded wo columns are zero, so a -1e30 bias masks padded logits exactly (f32!)
    bo_p = jnp.full((1, OUT_p), -1e30, f32).at[:, :OUT].set(bo.astype(f32))

    if L > 0:
        wh_p = jnp.zeros((L, H_p, H_p), bf16).at[:, :H, :H].set(wh.astype(bf16))
        bh_p = jnp.zeros((L, 1, H_p), f32).at[:, :, :H].set(bh.astype(f32))
    else:
        wh_p = bh_p = None

    grid = (B_p // tile_b,)
    flops = 2 * B_p * (IN_p * H_p + L * H_p * H_p + H_p * OUT_p)

    def run(weight_mode):
        args = [x_p, w1_p, b1_p]
        in_specs = [
            # batch-tiled activations: pipelined by Pallas (default double buffer).
            # TODO(synk): sweep pipeline_mode=pl.Buffered(3) here for tiny L/H.
            pl.BlockSpec((tile_b, IN_p), lambda i: (i, 0)),
            _weight_spec((IN_p, H_p), lambda i: (0, 0), weight_mode),
            _weight_spec((1, H_p), lambda i: (0, 0), weight_mode),
        ]
        if L > 0:
            args += [wh_p, bh_p]
            in_specs += [
                _weight_spec((L, H_p, H_p), lambda i: (0, 0, 0), weight_mode),
                _weight_spec((L, 1, H_p), lambda i: (0, 0, 0), weight_mode),
            ]
        args += [wo_p, bo_p]
        in_specs += [
            _weight_spec((H_p, OUT_p), lambda i: (0, 0), weight_mode),
            _weight_spec((1, OUT_p), lambda i: (0, 0), weight_mode),
        ]

        bytes_accessed = (sum(int(a.size) * a.dtype.itemsize for a in args)
                          + B_p * OUT_p * 4)

        return pl.pallas_call(
            _make_kernel(L),
            out_shape=jax.ShapeDtypeStruct((B_p, OUT_p), jnp.float32),
            grid=grid,
            in_specs=in_specs,
            out_specs=pl.BlockSpec((tile_b, OUT_p), lambda i: (i, 0)),  # lane-dense store
            compiler_params=pltpu.CompilerParams(
                dimension_semantics=("parallel",),   # megacore-shardable on v7x
                vmem_limit_bytes=vmem_limit,
            ),
            cost_estimate=pl.CostEstimate(
                flops=flops,
                transcendentals=B_p * OUT_p,
                bytes_accessed=bytes_accessed,
            ),
        )(*args)

    try:
        # invariant weights: single-buffered (constant index_map => never re-DMA'd)
        out = run(pl.Buffered(1))
    except Exception:
        # fall back to default pipelining if Buffered(1) is rejected by this jax/Mosaic
        out = run(None)

    if B_p != B or OUT_p != OUT:
        out = out[:B, :OUT]
    return out


def init_params(key, input_size, num_hidden_layer, hidden_size, output_size):
    """Deterministic synthetic init (torch Linear shapes pre-transposed to [in, out])."""
    ks = jax.random.split(key, 4 + 2 * num_hidden_layer)

    def lin(kw, kb, fan_in, fan_out):
        bound = 1.0 / jnp.sqrt(fan_in)
        w = jax.random.uniform(kw, (fan_in, fan_out), jnp.float32, -bound, bound)
        b = jax.random.uniform(kb, (1, fan_out), jnp.float32, -bound, bound)
        return w, b

    w1, b1 = lin(ks[0], ks[1], input_size, hidden_size)
    wh_list, bh_list = [], []
    for i in range(num_hidden_layer):
        w, b = lin(ks[2 + 2 * i], ks[3 + 2 * i], hidden_size, hidden_size)
        wh_list.append(w)
        bh_list.append(b)
    if num_hidden_layer > 0:
        wh = jnp.stack(wh_list, axis=0)
        bh = jnp.stack(bh_list, axis=0)
    else:
        wh = jnp.zeros((0, hidden_size, hidden_size), jnp.float32)
        bh = jnp.zeros((0, 1, hidden_size), jnp.float32)
    wo, bo = lin(ks[-2], ks[-1], hidden_size, output_size)
    return {"w1": w1, "b1": b1, "wh": wh, "bh": bh, "wo": wo, "bo": bo}


def reference_forward(x, params):
    """Pure-JAX f32 reference matching the PyTorch module semantics."""
    h = jnp.maximum(x @ params["w1"] + params["b1"], 0.0)
    for i in range(params["wh"].shape[0]):
        h = jnp.maximum(h @ params["wh"][i] + params["bh"][i], 0.0)
    logits = h @ params["wo"] + params["bo"]
    return jax.nn.softmax(logits, axis=1)


if __name__ == "__main__":
    # Small shapes consistent with the module: batch=2, input_size=16,
    # num_hidden_layer=2, hidden_size=32, output_size=8.
    B, IN, L, H, OUT = 2, 16, 2, 32, 8

    key = jax.random.PRNGKey(0)
    kx, kp = jax.random.split(key)
    x = jax.random.normal(kx, (B, IN), jnp.float32)
    params = init_params(kp, IN, L, H, OUT)

    out = vector_predictor_forward(x, params)
    out = jax.block_until_ready(out)

    ref = reference_forward(x, params)
    assert out.shape == (B, OUT)
    # bf16 matmul operands / bf16 x vs the pure-f32 reference -> loose tolerance
    assert jnp.allclose(out, ref, atol=2e-2, rtol=0.0), "mismatch vs reference"
    assert jnp.allclose(jnp.sum(out, axis=1), 1.0, atol=1e-4), "softmax rows must sum to 1"

    print("KERNEL_OK")
</pallas_src>

<mosaic_0001>
module attributes {stable_mosaic.version = 11 : i64} {
  func.func @kernel(%arg0: i32, %arg1: memref<8x128xbf16, #tpu.memory_space<vmem>>, %arg2: memref<128x128xbf16, #tpu.memory_space<vmem>>, %arg3: memref<1x128xf32, #tpu.memory_space<vmem>>, %arg4: memref<2x128x128xbf16, #tpu.memory_space<vmem>>, %arg5: memref<2x1x128xf32, #tpu.memory_space<vmem>>, %arg6: memref<128x128xbf16, #tpu.memory_space<vmem>>, %arg7: memref<1x128xf32, #tpu.memory_space<vmem>>, %arg8: memref<8x128xf32, #tpu.memory_space<vmem>>) attributes {dimension_semantics = [#tpu.dimension_semantics<parallel>], iteration_bounds = array<i64: 1>, scalar_prefetch = 0 : i64, scratch_operands = 0 : i64, tpu.core_type = #tpu.core_type<tc>, window_params = [{transform_indices = @transform_0, window_bounds = array<i64: 8, 128>}, {pipeline_mode = #tpu.pipeline_mode<synchronous>, transform_indices = @transform_1, window_bounds = array<i64: 128, 128>}, {pipeline_mode = #tpu.pipeline_mode<synchronous>, transform_indices = @transform_2, window_bounds = array<i64: 1, 128>}, {pipeline_mode = #tpu.pipeline_mode<synchronous>, transform_indices = @transform_3, window_bounds = array<i64: 2, 128, 128>}, {pipeline_mode = #tpu.pipeline_mode<synchronous>, transform_indices = @transform_4, window_bounds = array<i64: 2, 1, 128>}, {pipeline_mode = #tpu.pipeline_mode<synchronous>, transform_indices = @transform_5, window_bounds = array<i64: 128, 128>}, {pipeline_mode = #tpu.pipeline_mode<synchronous>, transform_indices = @transform_6, window_bounds = array<i64: 1, 128>}, {transform_indices = @transform_7, window_bounds = array<i64: 8, 128>}]} {
    %c0 = arith.constant 0 : index
    %c0_0 = arith.constant 0 : index
    %0 = vector.load %arg1[%c0, %c0_0] : memref<8x128xbf16, #tpu.memory_space<vmem>>, vector<8x128xbf16>
    %c0_1 = arith.constant 0 : index
    %c0_2 = arith.constant 0 : index
    %1 = vector.load %arg2[%c0_1, %c0_2] : memref<128x128xbf16, #tpu.memory_space<vmem>>, vector<128x128xbf16>
    %cst = arith.constant dense<0.000000e+00> : vector<8x128xf32>
    %2 = tpu.matmul %0, %1, %cst {dimension_numbers = #tpu.dot_dimension_numbers<[1], [0], [0], [1], [0, 0, 1, 1], [], []>} : vector<8x128xbf16>, vector<128x128xbf16>, vector<8x128xf32> -> vector<8x128xf32>
    %c0_3 = arith.constant 0 : index
    %c0_4 = arith.constant 0 : index
    %3 = vector.load %arg3[%c0_3, %c0_4] : memref<1x128xf32, #tpu.memory_space<vmem>>, vector<1x128xf32>
    %4 = vector.broadcast %3 : vector<1x128xf32> to vector<8x128xf32>
    %5 = arith.addf %2, %4 : vector<8x128xf32>
    %cst_5 = arith.constant 0.000000e+00 : f32
    %6 = vector.broadcast %cst_5 : f32 to vector<8x128xf32>
    %7 = arith.maximumf %5, %6 : vector<8x128xf32>
    %8 = arith.truncf %7 : vector<8x128xf32> to vector<8x128xbf16>
    %c0_6 = arith.constant 0 : index
    %c0_7 = arith.constant 0 : index
    %c0_8 = arith.constant 0 : index
    %9 = vector.load %arg4[%c0_6, %c0_7, %c0_8] : memref<2x128x128xbf16, #tpu.memory_space<vmem>>, vector<1x128x128xbf16>
    %10 = vector.shape_cast %9 : vector<1x128x128xbf16> to vector<128x128xbf16>
    %cst_9 = arith.constant dense<0.000000e+00> : vector<8x128xf32>
    %11 = tpu.matmul %8, %10, %cst_9 {dimension_numbers = #tpu.dot_dimension_numbers<[1], [0], [0], [1], [0, 0, 1, 1], [], []>} : vector<8x128xbf16>, vector<128x128xbf16>, vector<8x128xf32> -> vector<8x128xf32>
    %c0_10 = arith.constant 0 : index
    %c0_11 = arith.constant 0 : index
    %c0_12 = arith.constant 0 : index
    %12 = vector.load %arg5[%c0_10, %c0_11, %c0_12] : memref<2x1x128xf32, #tpu.memory_space<vmem>>, vector<1x1x128xf32>
    %13 = vector.shape_cast %12 : vector<1x1x128xf32> to vector<1x128xf32>
    %14 = vector.broadcast %13 : vector<1x128xf32> to vector<8x128xf32>
    %15 = arith.addf %11, %14 : vector<8x128xf32>
    %cst_13 = arith.constant 0.000000e+00 : f32
    %16 = vector.broadcast %cst_13 : f32 to vector<8x128xf32>
    %17 = arith.maximumf %15, %16 : vector<8x128xf32>
    %18 = arith.truncf %17 : vector<8x128xf32> to vector<8x128xbf16>
    %c1 = arith.constant 1 : index
    %c0_14 = arith.constant 0 : index
    %c0_15 = arith.constant 0 : index
    %19 = vector.load %arg4[%c1, %c0_14, %c0_15] : memref<2x128x128xbf16, #tpu.memory_space<vmem>>, vector<1x128x128xbf16>
    %20 = vector.shape_cast %19 : vector<1x128x128xbf16> to vector<128x128xbf16>
    %cst_16 = arith.constant dense<0.000000e+00> : vector<8x128xf32>
    %21 = tpu.matmul %18, %20, %cst_16 {dimension_numbers = #tpu.dot_dimension_numbers<[1], [0], [0], [1], [0, 0, 1, 1], [], []>} : vector<8x128xbf16>, vector<128x128xbf16>, vector<8x128xf32> -> vector<8x128xf32>
    %c1_17 = arith.constant 1 : index
    %c0_18 = arith.constant 0 : index
    %c0_19 = arith.constant 0 : index
    %22 = vector.load %arg5[%c1_17, %c0_18, %c0_19] : memref<2x1x128xf32, #tpu.memory_space<vmem>>, vector<1x1x128xf32>
    %23 = vector.shape_cast %22 : vector<1x1x128xf32> to vector<1x128xf32>
    %24 = vector.broadcast %23 : vector<1x128xf32> to vector<8x128xf32>
    %25 = arith.addf %21, %24 : vector<8x128xf32>
    %cst_20 = arith.constant 0.000000e+00 : f32
    %26 = vector.broadcast %cst_20 : f32 to vector<8x128xf32>
    %27 = arith.maximumf %25, %26 : vector<8x128xf32>
    %28 = arith.truncf %27 : vector<8x128xf32> to vector<8x128xbf16>
    %c0_21 = arith.constant 0 : index
    %c0_22 = arith.constant 0 : index
    %29 = vector.load %arg6[%c0_21, %c0_22] : memref<128x128xbf16, #tpu.memory_space<vmem>>, vector<128x128xbf16>
    %cst_23 = arith.constant dense<0.000000e+00> : vector<8x128xf32>
    %30 = tpu.matmul %28, %29, %cst_23 {dimension_numbers = #tpu.dot_dimension_numbers<[1], [0], [0], [1], [0, 0, 1, 1], [], []>} : vector<8x128xbf16>, vector<128x128xbf16>, vector<8x128xf32> -> vector<8x128xf32>
    %c0_24 = arith.constant 0 : index
    %c0_25 = arith.constant 0 : index
    %31 = vector.load %arg7[%c0_24, %c0_25] : memref<1x128xf32, #tpu.memory_space<vmem>>, vector<1x128xf32>
    %32 = vector.broadcast %31 : vector<1x128xf32> to vector<8x128xf32>
    %33 = arith.addf %30, %32 : vector<8x128xf32>
    %cst_26 = arith.constant dense<0xFF800000> : vector<8xf32>
    %34 = vector.multi_reduction <maximumf>, %33, %cst_26 [1] : vector<8x128xf32> to vector<8xf32>
    %35 = vector.shape_cast %34 : vector<8xf32> to vector<8x1xf32>
    %36 = vector.broadcast %35 : vector<8x1xf32> to vector<8x128xf32>
    %37 = arith.subf %33, %36 : vector<8x128xf32>
    %38 = math.exp %37 : vector<8x128xf32>
    %cst_27 = arith.constant dense<0.000000e+00> : vector<8xf32>
    %39 = vector.multi_reduction <add>, %38, %cst_27 [1] : vector<8x128xf32> to vector<8xf32>
    %40 = vector.shape_cast %39 : vector<8xf32> to vector<8x1xf32>
    %41 = vector.broadcast %40 : vector<8x1xf32> to vector<8x128xf32>
    %42 = arith.divf %38, %41 : vector<8x128xf32>
    %c0_28 = arith.constant 0 : index
    %c0_29 = arith.constant 0 : index
    %43 = vector.load %arg8[%c0_28, %c0_29] : memref<8x128xf32, #tpu.memory_space<vmem>>, vector<8x128xf32>
    tpu.vector_store %arg8[%c0_28, %c0_29], %42 {strides = array<i32>} : memref<8x128xf32, #tpu.memory_space<vmem>>, vector<8x128xf32>,
    return
  }
  func.func @transform_0(%arg0: i32) -> (i32, i32) {
    %c0_i32 = arith.constant 0 : i32
    %c0_i32_0 = arith.constant 0 : i32
    return %arg0, %c0_i32 : i32, i32
  }
  func.func @transform_1(%arg0: i32) -> (i32, i32) {
    %c0_i32 = arith.constant 0 : i32
    %c0_i32_0 = arith.constant 0 : i32
    %c0_i32_1 = arith.constant 0 : i32
    return %c0_i32, %c0_i32_0 : i32, i32
  }
  func.func @transform_2(%arg0: i32) -> (i32, i32) {
    %c0_i32 = arith.constant 0 : i32
    %c0_i32_0 = arith.constant 0 : i32
    %c0_i32_1 = arith.constant 0 : i32
    return %c0_i32, %c0_i32_0 : i32, i32
  }
  func.func @transform_3(%arg0: i32) -> (i32, i32, i32) {
    %c0_i32 = arith.constant 0 : i32
    %c0_i32_0 = arith.constant 0 : i32
    %c0_i32_1 = arith.constant 0 : i32
    %c0_i32_2 = arith.constant 0 : i32
    return %c0_i32, %c0_i32_0, %c0_i32_1 : i32, i32, i32
  }
  func.func @transform_4(%arg0: i32) -> (i32, i32, i32) {
    %c0_i32 = arith.constant 0 : i32
    %c0_i32_0 = arith.constant 0 : i32
    %c0_i32_1 = arith.constant 0 : i32
    %c0_i32_2 = arith.constant 0 : i32
    return %c0_i32, %c0_i32_0, %c0_i32_1 : i32, i32, i32
  }
  func.func @transform_5(%arg0: i32) -> (i32, i32) {
    %c0_i32 = arith.constant 0 : i32
    %c0_i32_0 = arith.constant 0 : i32
    %c0_i32_1 = arith.constant 0 : i32
    return %c0_i32, %c0_i32_0 : i32, i32
  }
  func.func @transform_6(%arg0: i32) -> (i32, i32) {
    %c0_i32 = arith.constant 0 : i32
    %c0_i32_0 = arith.constant 0 : i32
    %c0_i32_1 = arith.constant 0 : i32
    return %c0_i32, %c0_i32_0 : i32, i32
  }
  func.func @transform_7(%arg0: i32) -> (i32, i32) {
    %c0_i32 = arith.constant 0 : i32
    %c0_i32_0 = arith.constant 0 : i32
    return %arg0, %c0_i32 : i32, i32
  }
}

module attributes {stable_mosaic.version = 11 : i64} {
  func.func @kernel(%arg0: i32, %arg1: memref<8x128xbf16, #tpu.memory_space<vmem>>, %arg2: memref<128x128xbf16, #tpu.memory_space<vmem>>, %arg3: memref<1x128xf32, #tpu.memory_space<vmem>>, %arg4: memref<2x128x128xbf16, #tpu.memory_space<vmem>>, %arg5: memref<2x1x128xf32, #tpu.memory_space<vmem>>, %arg6: memref<128x128xbf16, #tpu.memory_space<vmem>>, %arg7: memref<1x128xf32, #tpu.memory_space<vmem>>, %arg8: memref<8x128xf32, #tpu.memory_space<vmem>>) attributes {dimension_semantics = [#tpu.dimension_semantics<parallel>], iteration_bounds = array<i64: 1>, scalar_prefetch = 0 : i64, scratch_operands = 0 : i64, tpu.core_type = #tpu.core_type<tc>, window_params = [{transform_indices = @transform_0, window_bounds = array<i64: 8, 128>}, {pipeline_mode = #tpu.pipeline_mode<synchronous>, transform_indices = @transform_1, window_bounds = array<i64: 128, 128>}, {pipeline_mode = #tpu.pipeline_mode<synchronous>, transform_indices = @transform_2, window_bounds = array<i64: 1, 128>}, {pipeline_mode = #tpu.pipeline_mode<synchronous>, transform_indices = @transform_3, window_bounds = array<i64: 2, 128, 128>}, {pipeline_mode = #tpu.pipeline_mode<synchronous>, transform_indices = @transform_4, window_bounds = array<i64: 2, 1, 128>}, {pipeline_mode = #tpu.pipeline_mode<synchronous>, transform_indices = @transform_5, window_bounds = array<i64: 128, 128>}, {pipeline_mode = #tpu.pipeline_mode<synchronous>, transform_indices = @transform_6, window_bounds = array<i64: 1, 128>}, {transform_indices = @transform_7, window_bounds = array<i64: 8, 128>}]} {
    %c0 = arith.constant 0 : index
    %c0_0 = arith.constant 0 : index
    %0 = vector.load %arg1[%c0, %c0_0] : memref<8x128xbf16, #tpu.memory_space<vmem>>, vector<8x128xbf16>
    %c0_1 = arith.constant 0 : index
    %c0_2 = arith.constant 0 : index
    %1 = vector.load %arg2[%c0_1, %c0_2] : memref<128x128xbf16, #tpu.memory_space<vmem>>, vector<128x128xbf16>
    %cst = arith.constant dense<0.000000e+00> : vector<8x128xf32>
    %2 = tpu.matmul %0, %1, %cst {dimension_numbers = #tpu.dot_dimension_numbers<[1], [0], [0], [1], [0, 0, 1, 1], [], []>} : vector<8x128xbf16>, vector<128x128xbf16>, vector<8x128xf32> -> vector<8x128xf32>
    %c0_3 = arith.constant 0 : index
    %c0_4 = arith.constant 0 : index
    %3 = vector.load %arg3[%c0_3, %c0_4] : memref<1x128xf32, #tpu.memory_space<vmem>>, vector<1x128xf32>
    %4 = vector.broadcast %3 : vector<1x128xf32> to vector<8x128xf32>
    %5 = arith.addf %2, %4 : vector<8x128xf32>
    %cst_5 = arith.constant 0.000000e+00 : f32
    %6 = vector.broadcast %cst_5 : f32 to vector<8x128xf32>
    %7 = arith.maximumf %5, %6 : vector<8x128xf32>
    %8 = arith.truncf %7 : vector<8x128xf32> to vector<8x128xbf16>
    %c0_6 = arith.constant 0 : index
    %c0_7 = arith.constant 0 : index
    %c0_8 = arith.constant 0 : index
    %9 = vector.load %arg4[%c0_6, %c0_7, %c0_8] : memref<2x128x128xbf16, #tpu.memory_space<vmem>>, vector<1x128x128xbf16>
    %10 = vector.shape_cast %9 : vector<1x128x128xbf16> to vector<128x128xbf16>
    %cst_9 = arith.constant dense<0.000000e+00> : vector<8x128xf32>
    %11 = tpu.matmul %8, %10, %cst_9 {dimension_numbers = #tpu.dot_dimension_numbers<[1], [0], [0], [1], [0, 0, 1, 1], [], []>} : vector<8x128xbf16>, vector<128x128xbf16>, vector<8x128xf32> -> vector<8x128xf32>
    %c0_10 = arith.constant 0 : index
    %c0_11 = arith.constant 0 : index
    %c0_12 = arith.constant 0 : index
    %12 = vector.load %arg5[%c0_10, %c0_11, %c0_12] : memref<2x1x128xf32, #tpu.memory_space<vmem>>, vector<1x1x128xf32>
    %13 = vector.shape_cast %12 : vector<1x1x128xf32> to vector<1x128xf32>
    %14 = vector.broadcast %13 : vector<1x128xf32> to vector<8x128xf32>
    %15 = arith.addf %11, %14 : vector<8x128xf32>
    %cst_13 = arith.constant 0.000000e+00 : f32
    %16 = vector.broadcast %cst_13 : f32 to vector<8x128xf32>
    %17 = arith.maximumf %15, %16 : vector<8x128xf32>
    %18 = arith.truncf %17 : vector<8x128xf32> to vector<8x128xbf16>
    %c1 = arith.constant 1 : index
    %c0_14 = arith.constant 0 : index
    %c0_15 = arith.constant 0 : index
    %19 = vector.load %arg4[%c1, %c0_14, %c0_15] : memref<2x128x128xbf16, #tpu.memory_space<vmem>>, vector<1x128x128xbf16>
    %20 = vector.shape_cast %19 : vector<1x128x128xbf16> to vector<128x128xbf16>
    %cst_16 = arith.constant dense<0.000000e+00> : vector<8x128xf32>
    %21 = tpu.matmul %18, %20, %cst_16 {dimension_numbers = #tpu.dot_dimension_numbers<[1], [0], [0], [1], [0, 0, 1, 1], [], []>} : vector<8x128xbf16>, vector<128x128xbf16>, vector<8x128xf32> -> vector<8x128xf32>
    %c1_17 = arith.constant 1 : index
    %c0_18 = arith.constant 0 : index
    %c0_19 = arith.constant 0 : index
    %22 = vector.load %arg5[%c1_17, %c0_18, %c0_19] : memref<2x1x128xf32, #tpu.memory_space<vmem>>, vector<1x1x128xf32>
    %23 = vector.shape_cast %22 : vector<1x1x128xf32> to vector<1x128xf32>
    %24 = vector.broadcast %23 : vector<1x128xf32> to vector<8x128xf32>
    %25 = arith.addf %21, %24 : vector<8x128xf32>
    %cst_20 = arith.constant 0.000000e+00 : f32
    %26 = vector.broadcast %cst_20 : f32 to vector<8x128xf32>
    %27 = arith.maximumf %25, %26 : vector<8x128xf32>
    %28 = arith.truncf %27 : vector<8x128xf32> to vector<8x128xbf16>
    %c0_21 = arith.constant 0 : index
    %c0_22 = arith.constant 0 : index
    %29 = vector.load %arg6[%c0_21, %c0_22] : memref<128x128xbf16, #tpu.memory_space<vmem>>, vector<128x128xbf16>
    %cst_23 = arith.constant dense<0.000000e+00> : vector<8x128xf32>
    %30 = tpu.matmul %28, %29, %cst_23 {dimension_numbers = #tpu.dot_dimension_numbers<[1], [0], [0], [1], [0, 0, 1, 1], [], []>} : vector<8x128xbf16>, vector<128x128xbf16>, vector<8x128xf32> -> vector<8x128xf32>
    %c0_24 = arith.constant 0 : index
    %c0_25 = arith.constant 0 : index
    %31 = vector.load %arg7[%c0_24, %c0_25] : memref<1x128xf32, #tpu.memory_space<vmem>>, vector<1x128xf32>
    %32 = vector.broadcast %31 : vector<1x128xf32> to vector<8x128xf32>
    %33 = arith.addf %30, %32 : vector<8x128xf32>
    %cst_26 = arith.constant dense<0xFF800000> : vector<8xf32>
    %34 = vector.multi_reduction <maximumf>, %33, %cst_26 [1] : vector<8x128xf32> to vector<8xf32>
    %35 = vector.shape_cast %34 : vector<8xf32> to vector<8x1xf32>
    %36 = vector.broadcast %35 : vector<8x1xf32> to vector<8x128xf32>
    %37 = arith.subf %33, %36 : vector<8x128xf32>
    %38 = math.exp %37 : vector<8x128xf32>
    %cst_27 = arith.constant dense<0.000000e+00> : vector<8xf32>
    %39 = vector.multi_reduction <add>, %38, %cst_27 [1] : vector<8x128xf32> to vector<8xf32>
    %40 = vector.shape_cast %39 : vector<8xf32> to vector<8x1xf32>
    %41 = vector.broadcast %40 : vector<8x1xf32> to vector<8x128xf32>
    %42 = arith.divf %38, %41 : vector<8x128xf32>
    %c0_28 = arith.constant 0 : index
    %c0_29 = arith.constant 0 : index
    %43 = vector.load %arg8[%c0_28, %c0_29] : memref<8x128xf32, #tpu.memory_space<vmem>>, vector<8x128xf32>
    tpu.vector_store %arg8[%c0_28, %c0_29], %42 {strides = array<i32>} : memref<8x128xf32, #tpu.memory_space<vmem>>, vector<8x128xf32>,
    return
  }
  func.func @transform_0(%arg0: i32) -> (i32, i32) {
    %c0_i32 = arith.constant 0 : i32
    %c0_i32_0 = arith.constant 0 : i32
    return %arg0, %c0_i32 : i32, i32
  }
  func.func @transform_1(%arg0: i32) -> (i32, i32) {
    %c0_i32 = arith.constant 0 : i32
    %c0_i32_0 = arith.constant 0 : i32
    %c0_i32_1 = arith.constant 0 : i32
    return %c0_i32, %c0_i32_0 : i32, i32
  }
  func.func @transform_2(%arg0: i32) -> (i32, i32) {
    %c0_i32 = arith.constant 0 : i32
    %c0_i32_0 = arith.constant 0 : i32
    %c0_i32_1 = arith.constant 0 : i32
    return %c0_i32, %c0_i32_0 : i32, i32
  }
  func.func @transform_3(%arg0: i32) -> (i32, i32, i32) {
    %c0_i32 = arith.constant 0 : i32
    %c0_i32_0 = arith.constant 0 : i32
    %c0_i32_1 = arith.constant 0 : i32
    %c0_i32_2 = arith.constant 0 : i32
    return %c0_i32, %c0_i32_0, %c0_i32_1 : i32, i32, i32
  }
  func.func @transform_4(%arg0: i32) -> (i32, i32, i32) {
    %c0_i32 = arith.constant 0 : i32
    %c0_i32_0 = arith.constant 0 : i32
    %c0_i32_1 = arith.constant 0 : i32
    %c0_i32_2 = arith.constant 0 : i32
    return %c0_i32, %c0_i32_0, %c0_i32_1 : i32, i32, i32
  }
  func.func @transform_5(%arg0: i32) -> (i32, i32) {
    %c0_i32 = arith.constant 0 : i32
    %c0_i32_0 = arith.constant 0 : i32
    %c0_i32_1 = arith.constant 0 : i32
    return %c0_i32, %c0_i32_0 : i32, i32
  }
  func.func @transform_6(%arg0: i32) -> (i32, i32) {
    %c0_i32 = arith.constant 0 : i32
    %c0_i32_0 = arith.constant 0 : i32
    %c0_i32_1 = arith.constant 0 : i32
    return %c0_i32, %c0_i32_0 : i32, i32
  }
  func.func @transform_7(%arg0: i32) -> (i32, i32) {
    %c0_i32 = arith.constant 0 : i32
    %c0_i32_0 = arith.constant 0 : i32
    return %arg0, %c0_i32 : i32, i32
  }
}

</mosaic_0001>

<bundles_post_ra>
// kernel: tpu_custom_call.1
= control target key start
LH: loop header
LB: loop body
LE: loop exit
PB: predicated region body
PF: predicated region fallthrough
CT: control target
= control target key end

     0   :  { %12 = vsyncpa [#allocation3], 0  ;;  %s1047_s0 = inlined_call_operand.hbm [shape: bf16[8,128], index: 0, kind: input, shape index: {}]   ;;  %s1048_s1 = inlined_call_operand.hbm [shape: bf16[128,128], index: 1, kind: input, shape index: {}]   ;;  %s1049_s2 = inlined_call_operand.vmem [shape: f32[1,128], index: 2, kind: input, shape index: {}]   ;;  %s1050_s3 = inlined_call_operand.hbm [shape: bf16[2,128,128], index: 3, kind: input, shape index: {}]   ;;  %s1051_s4 = inlined_call_operand.vmem [shape: f32[2,1,128], index: 4, kind: input, shape index: {}]   ;;  %s1052_s5 = inlined_call_operand.hbm [shape: bf16[128,128], index: 5, kind: input, shape index: {}]   ;;  %s1053_s6 = inlined_call_operand.vmem [shape: f32[1,128], index: 6, kind: input, shape index: {}]   ;;  %s1054_s7 = inlined_call_operand.hbm [shape: f32[8,128], index: 7, kind: output, shape index: {}]  }
   0x1   :  { %13 = vsyncpa [#allocation6], 0 }
   0x2   :  { %14 = vsyncpa [#allocation9], 0 }
   0x3   :  { %15 = vsyncpa [#allocation4], 0  ;;  %s877_s24 = smov [#allocation5]   ;;  %s759_s28 = scalar_lea.hbm %s1048_s1, 1024 }
   0x4   :  { %s31_s25 = sshll.u32 %s877_s24, 4  ;;  %p760_p0 = scmp.ne.s32.totalorder %s1048_s1, %s759_s28  ;;  %s32_s25 = int_to_ptr.vmem [resolvable:$true] %s31_s25 }
   0x5   :  { %p763_p1 = scmp.lt.u32.totalorder %s759_s28, %s1048_s1 }
   0x7   :  { %p765_p2 = pnand %p763_p1, %p760_p0 }
   0x9   :  { %768 = shalt.err (!%p765_p2)
}
   0xa   :  { %s769_s10 = scalar_lea.vmem %s32_s25, 1024  ;;  %p774_p4 = scmp.lt.s32.totalorder %s32_s25, %s32_s25 }
   0xb   :  { %p770_p3 = scmp.ne.s32.totalorder %s32_s25, %s769_s10  ;;  %p775_p5 = scmp.lt.s32.totalorder %s769_s10, %s769_s10 }
   0xd   :  { %p776_p6 = por %p775_p5, %p774_p4 }
   0xf   :  { %p777_p7 = pnand %p776_p6, %p770_p3 }
  0x11   :  { %780 = shalt.err (!%p777_p7)
}
  0x12   :  { %s878_s11 = smov 64   ;;  %s879_s12 = smov 4  }
  0x13   :  { %37 = dma.hbm_to_vmem [thread:$0]  %s1048_s1, 1024, %s32_s25, [#allocation6], %s878_s11, %s878_s11, %s879_s12  }
  0x14   :  { %s880_s15 = smov [#allocation2]   ;;  %s881_s17 = smov [#allocation7]  }
  0x15   :  { %s22_s16 = sshll.u32 %s880_s15, 4  ;;  %s45_s18 = sshll.u32 %s881_s17, 4  ;;  %s23_s16 = int_to_ptr.vmem [resolvable:$true] %s22_s16  ;;  %s46_s18 = int_to_ptr.vmem [resolvable:$true] %s45_s18 }
  0x16   :  { %s781_s21 = scalar_lea.hbm %s1047_s0, 64 }
  0x17   :  { %p782_p8 = scmp.ne.s32.totalorder %s1047_s0, %s781_s21  ;;  %p785_p9 = scmp.lt.u32.totalorder %s781_s21, %s1047_s0 }
  0x19   :  { %p787_p10 = pnand %p785_p9, %p782_p8 }
  0x1b   :  { %790 = shalt.err (!%p787_p10)
}
  0x1c   :  { %s791_s1 = scalar_lea.vmem %s23_s16, 64  ;;  %p796_p12 = scmp.lt.s32.totalorder %s23_s16, %s23_s16 }
  0x1d   :  { %p792_p11 = scmp.ne.s32.totalorder %s23_s16, %s791_s1  ;;  %p797_p13 = scmp.lt.s32.totalorder %s791_s1, %s791_s1 }
  0x1f   :  { %p798_p0 = por %p797_p13, %p796_p12 }
  0x21   :  { %p799_p1 = pnand %p798_p0, %p792_p11 }
  0x23   :  { %802 = shalt.err (!%p799_p1)
}
  0x24   :  { %25 = dma.hbm_to_vmem [thread:$0]  %s1047_s0, 64, %s23_s16, [#allocation3]  }
  0x25   :  { %s803_s30 = scalar_lea.hbm %s1050_s3, 2048 }
  0x26   :  { %p804_p2 = scmp.ne.s32.totalorder %s1050_s3, %s803_s30  ;;  %p807_p3 = scmp.lt.u32.totalorder %s803_s30, %s1050_s3 }
  0x28   :  { %p809_p4 = pnand %p807_p3, %p804_p2 }
  0x2a   :  { %812 = shalt.err (!%p809_p4)
}
  0x2b   :  { %s813_s14 = scalar_lea.vmem %s46_s18, 2048  ;;  %p818_p6 = scmp.lt.s32.totalorder %s46_s18, %s46_s18 }
  0x2c   :  { %p814_p5 = scmp.ne.s32.totalorder %s46_s18, %s813_s14  ;;  %p819_p7 = scmp.lt.s32.totalorder %s813_s14, %s813_s14 }
  0x2e   :  { %p820_p8 = por %p819_p7, %p818_p6 }
  0x30   :  { %p821_p9 = pnand %p820_p8, %p814_p5 }
  0x32   :  { %824 = shalt.err (!%p821_p9)
}
  0x33   :  { %51 = dma.hbm_to_vmem [thread:$0]  %s1050_s3, 2048, %s46_s18, [#allocation6], %s878_s11, %s878_s11, %s879_s12  }
  0x34   :  { %s882_s16 = smov [#allocation8]   ;;  %s825_s21 = scalar_lea.hbm %s1052_s5, 1024 }
  0x35   :  { %s59_s17 = sshll.u32 %s882_s16, 4  ;;  %p826_p10 = scmp.ne.s32.totalorder %s1052_s5, %s825_s21  ;;  %s60_s17 = int_to_ptr.vmem [resolvable:$true] %s59_s17 }
  0x36   :  { %p829_p11 = scmp.lt.u32.totalorder %s825_s21, %s1052_s5 }
  0x38   :  { %p831_p12 = pnand %p829_p11, %p826_p10 }
  0x3a   :  { %834 = shalt.err (!%p831_p12)
}
  0x3b   :  { %s835_s1 = scalar_lea.vmem %s60_s17, 1024  ;;  %p840_p0 = scmp.lt.s32.totalorder %s60_s17, %s60_s17 }
  0x3c   :  { %p836_p13 = scmp.ne.s32.totalorder %s60_s17, %s835_s1  ;;  %p841_p1 = scmp.lt.s32.totalorder %s835_s1, %s835_s1 }
  0x3e   :  { %p842_p2 = por %p841_p1, %p840_p0 }
  0x40   :  { %p843_p3 = pnand %p842_p2, %p836_p13 }
  0x42   :  { %846 = shalt.err (!%p843_p3)
}
  0x43   :  { %65 = dma.hbm_to_vmem [thread:$0]  %s1052_s5, 1024, %s60_s17, [#allocation9], %s878_s11, %s878_s11, %s879_s12  }
  0x44   :  { %869 = dma.done.wait [#allocation3], 64  }
  0x45   :  { %870 = vsyncadd [#allocation3], 4294967232 }
  0x46   :  { %871 = dma.done.wait [#allocation6], 3072  }
  0x47   :  { %872 = vsyncadd [#allocation6], 4294964224 }
  0x48   :  { %873 = dma.done.wait [#allocation9], 1024  }
  0x49   :  { %874 = vsyncadd [#allocation9], 4294966272  ;;  %v883_v0 = vmov 0.0   ;;  %vm884_vm0 = vmmov 0   ;;  %v723_v1 = vld [vmem:[#allocation5] sm:$0xff]   ;;  %v724_v2 = vld [vmem:[#allocation5 + $0x8] sm:$0xff]  }
  0x4a   :  { %634 = vmatprep.subr.bf16.mxu0 %v883_v0  ;;  %650 = vmatprep.mubr.msk.bf16.mxu0 %vm884_vm0, %v883_v0  ;;  %v725_v3 = vld [vmem:[#allocation5 + $0x10] sm:$0xff]   ;;  %v731_v4 = vld [vmem:[#allocation7] sm:$0xff]   ;;  %v726_v5 = vld [vmem:[#allocation5 + $0x18] sm:$0xff]  }
  0x4b   :  { %654 = vmatprep.subr.bf16.mxu1 %v883_v0  ;;  %670 = vmatprep.mubr.msk.bf16.mxu1 %vm884_vm0, %v883_v0  ;;  %v732_v6 = vld [vmem:[#allocation7 + $0x8] sm:$0xff]   ;;  %v727_v7 = vld [vmem:[#allocation5 + $0x20] sm:$0xff]   ;;  %v733_v8 = vld [vmem:[#allocation7 + $0x10] sm:$0xff]  }
  0x4c   :  { %635 = vmatpush3.bf16.msra.mxu0 %v723_v1  ;;  %655 = vmatpush3.bf16.msra.mxu1 %v731_v4  ;;  %v728_v9 = vld [vmem:[#allocation5 + $0x28] sm:$0xff]   ;;  %v734_v10 = vld [vmem:[#allocation7 + $0x18] sm:$0xff]   ;;  %v729_v11 = vld [vmem:[#allocation5 + $0x30] sm:$0xff]  }
  0x4d   :  { %636 = vmatprep.subr.bf16.mxu0 %v883_v0  ;;  %656 = vmatprep.subr.bf16.mxu1 %v883_v0  ;;  %v735_v12 = vld [vmem:[#allocation7 + $0x20] sm:$0xff]   ;;  %v730_v13 = vld [vmem:[#allocation5 + $0x38] sm:$0xff]   ;;  %v736_v14 = vld [vmem:[#allocation7 + $0x28] sm:$0xff]  }
  0x4e   :  { %v81_v15 = vld [vmem:[#allocation2] sm:$0xf]  ;;  %v737_v16 = vld [vmem:[#allocation7 + $0x30] sm:$0xff]   ;;  %v739_v18 = vld [vmem:[#allocation7 + $0x40] sm:$0xff]  }
  0x4f   :  { %v738_v17 = vld [vmem:[#allocation7 + $0x38] sm:$0xff]   ;;  %v740_v19 = vld [vmem:[#allocation7 + $0x48] sm:$0xff]   ;;  %v741_v20 = vld [vmem:[#allocation7 + $0x50] sm:$0xff]  }
  0x50   :  { %637 = vmatpush3.bf16.msra.mxu0 %v724_v2  ;;  %657 = vmatpush3.bf16.msra.mxu1 %v732_v6  ;;  %v742_v21 = vld [vmem:[#allocation7 + $0x58] sm:$0xff]   ;;  %v743_v22 = vld [vmem:[#allocation7 + $0x60] sm:$0xff]   ;;  %v744_v23 = vld [vmem:[#allocation7 + $0x68] sm:$0xff]  }
  0x51   :  { %638 = vmatprep.subr.bf16.mxu0 %v883_v0  ;;  %658 = vmatprep.subr.bf16.mxu1 %v883_v0  ;;  %v561_v24 = vld [vmem:[%s1049_s2] ss:$0 sm:$0xff]  ;;  %v745_v32 = vld [vmem:[#allocation7 + $0x70] sm:$0xff]   ;;  %v747_v34 = vld [vmem:[#allocation8] sm:$0xff]  }
  0x52   :  { %v746_v33 = vld [vmem:[#allocation7 + $0x78] sm:$0xff]   ;;  %v748_v35 = vld [vmem:[#allocation8 + $0x8] sm:$0xff]   ;;  %v749_v36 = vld [vmem:[#allocation8 + $0x10] sm:$0xff]  }
  0x53   :  { %v750_v37 = vld [vmem:[#allocation8 + $0x18] sm:$0xff]   ;;  %v751_v38 = vld [vmem:[#allocation8 + $0x20] sm:$0xff]   ;;  %v752_v39 = vld [vmem:[#allocation8 + $0x28] sm:$0xff]  }
  0x54   :  { %639 = vmatpush3.bf16.msra.mxu0 %v725_v3  ;;  %659 = vmatpush3.bf16.msra.mxu1 %v733_v8  ;;  %v570_v40 = vld [vmem:[%s1051_s4] ss:$0 sm:$0xff]  ;;  %v753_v48 = vld [vmem:[#allocation8 + $0x30] sm:$0xff]   ;;  %v580_v50 = vld [vmem:[%s1051_s4 + $0x1] ss:$0 sm:$0xff]  ;;  %s885_s4 = smov [#allocation10]  }
  0x55   :  { %640 = vmatprep.subr.bf16.mxu0 %v883_v0  ;;  %660 = vmatprep.subr.bf16.mxu1 %v883_v0  ;;  %v754_v49 = vld [vmem:[#allocation8 + $0x38] sm:$0xff]   ;;  %s550_s30 = sshll.u32 %s885_s4, 4  ;;  %s551_s30 = int_to_ptr.vmem [resolvable:$true] %s550_s30 }
  0x56   :  { %v589_v58 = vld [vmem:[%s1053_s6] ss:$0 sm:$0xff]  ;;  %s847_s6 = scalar_lea.vmem %s551_s30, 128  ;;  %p852_p5 = scmp.lt.s32.totalorder %s551_s30, %s551_s30 }
  0x57   :  { %p848_p4 = scmp.ne.s32.totalorder %s551_s30, %s847_s6  ;;  %p853_p6 = scmp.lt.s32.totalorder %s847_s6, %s847_s6 }
  0x58   :  { %641 = vmatpush3.bf16.msra.mxu0 %v726_v5  ;;  %661 = vmatpush3.bf16.msra.mxu1 %v734_v10 }
  0x59   :  { %642 = vmatprep.subr.bf16.mxu0 %v883_v0  ;;  %662 = vmatprep.subr.bf16.mxu1 %v883_v0  ;;  %p854_p7 = por %p853_p6, %p852_p5 }
  0x5b   :  { %p855_p8 = pnand %p854_p7, %p848_p4 }
  0x5c   :  { %643 = vmatpush3.bf16.msra.mxu0 %v727_v7  ;;  %663 = vmatpush3.bf16.msra.mxu1 %v735_v12 }
  0x5d   :  { %644 = vmatprep.subr.bf16.mxu0 %v883_v0  ;;  %664 = vmatprep.subr.bf16.mxu1 %v883_v0 }
  0x60   :  { %645 = vmatpush3.bf16.msra.mxu0 %v728_v9  ;;  %665 = vmatpush3.bf16.msra.mxu1 %v736_v14 }
  0x61   :  { %646 = vmatprep.subr.bf16.mxu0 %v883_v0  ;;  %666 = vmatprep.subr.bf16.mxu1 %v883_v0 }
  0x64   :  { %647 = vmatpush3.bf16.msra.mxu0 %v729_v11  ;;  %667 = vmatpush3.bf16.msra.mxu1 %v737_v16 }
  0x65   :  { %648 = vmatprep.subr.bf16.mxu0 %v883_v0  ;;  %668 = vmatprep.subr.bf16.mxu1 %v883_v0 }
  0x68   :  { %649 = vmatpush3.bf16.msra.mxu0 %v730_v13  ;;  %669 = vmatpush3.bf16.msra.mxu1 %v738_v17 }
  0x69   :  { %674 = vmatprep.subr.bf16.mxu0 %v883_v0  ;;  %694 = vmatprep.subr.bf16.mxu1 %v883_v0 }
  0x6b   :  { %651 = vmatmul.mubr.bf16.vlgmr.msra.gmra.mrb[0].mxu0 %v81_v15 }
  0x6c   :  { %690 = vmatprep.mubr.msk.bf16.mxu0 %vm884_vm0, %v883_v0  ;;  %675 = vmatpush3.bf16.msra.mxu0 %v739_v18 }
  0x6d   :  { %676 = vmatprep.subr.bf16.mxu0 %v883_v0 }
  0x70   :  { %677 = vmatpush3.bf16.msra.mxu0 %v740_v19 }
  0x71   :  { %678 = vmatprep.subr.bf16.mxu0 %v883_v0 }
  0x74   :  { %679 = vmatpush3.bf16.msra.mxu0 %v741_v20 }
  0x75   :  { %680 = vmatprep.subr.bf16.mxu0 %v883_v0 }
  0x78   :  { %681 = vmatpush3.bf16.msra.mxu0 %v742_v21 }
  0x79   :  { %682 = vmatprep.subr.bf16.mxu0 %v883_v0 }
  0x7c   :  { %683 = vmatpush3.bf16.msra.mxu0 %v743_v22 }
  0x7d   :  { %684 = vmatprep.subr.bf16.mxu0 %v883_v0 }
  0x80   :  { %685 = vmatpush3.bf16.msra.mxu0 %v744_v23 }
  0x81   :  { %686 = vmatprep.subr.bf16.mxu0 %v883_v0 }
  0x84   :  { %687 = vmatpush3.bf16.msra.mxu0 %v745_v32 }
  0x85   :  { %688 = vmatprep.subr.bf16.mxu0 %v883_v0 }
  0x88   :  { %689 = vmatpush3.bf16.msra.mxu0 %v746_v33 }
 0x13e   :  { %v187_v25 = vpop.f32.mrb[0].mxu0 }
 0x13f   :  { %v188_v26 = vadd.f32 %v561_v24, %v187_v25  ;;  %v652_v27 = vpop.f32.mrb[1].mxu0 }
 0x140   :  { %v190_v28 = vpop.f32.mrb[2].mxu0 }
 0x141   :  { %v193_v29 = vmax.f32 %v188_v26, 0.0  ;;  %v653_v30 = vpop.f32.mrb[3].mxu0 }
 0x143   :  { %v194_v31 = vpack.c.bf16 %v193_v29, %v193_v29 }
 0x145   :  { %671 = vmatmul.mubr.bf16.vlgmr.msra.gmra.mrb[0].mxu1 %v194_v31 }
 0x146   :  { %710 = vmatprep.mubr.msk.bf16.mxu1 %vm884_vm0, %v883_v0  ;;  %695 = vmatpush3.bf16.msra.mxu1 %v747_v34 }
 0x147   :  { %696 = vmatprep.subr.bf16.mxu1 %v883_v0 }
 0x14a   :  { %697 = vmatpush3.bf16.msra.mxu1 %v748_v35 }
 0x14b   :  { %698 = vmatprep.subr.bf16.mxu1 %v883_v0 }
 0x14e   :  { %699 = vmatpush3.bf16.msra.mxu1 %v749_v36 }
 0x14f   :  { %700 = vmatprep.subr.bf16.mxu1 %v883_v0 }
 0x152   :  { %701 = vmatpush3.bf16.msra.mxu1 %v750_v37 }
 0x153   :  { %702 = vmatprep.subr.bf16.mxu1 %v883_v0 }
 0x156   :  { %703 = vmatpush3.bf16.msra.mxu1 %v751_v38 }
 0x157   :  { %704 = vmatprep.subr.bf16.mxu1 %v883_v0 }
 0x15a   :  { %705 = vmatpush3.bf16.msra.mxu1 %v752_v39 }
 0x15b   :  { %706 = vmatprep.subr.bf16.mxu1 %v883_v0 }
 0x15e   :  { %707 = vmatpush3.bf16.msra.mxu1 %v753_v48 }
 0x15f   :  { %708 = vmatprep.subr.bf16.mxu1 %v883_v0 }
 0x162   :  { %709 = vmatpush3.bf16.msra.mxu1 %v754_v49 }
 0x218   :  { %v300_v41 = vpop.f32.mrb[0].mxu1 }
 0x219   :  { %v301_v42 = vadd.f32 %v570_v40, %v300_v41  ;;  %v672_v43 = vpop.f32.mrb[1].mxu1 }
 0x21a   :  { %v303_v44 = vpop.f32.mrb[2].mxu1 }
 0x21b   :  { %v306_v45 = vmax.f32 %v301_v42, 0.0  ;;  %v673_v46 = vpop.f32.mrb[3].mxu1 }
 0x21d   :  { %v307_v47 = vpack.c.bf16 %v306_v45, %v306_v45 }
 0x21f   :  { %691 = vmatmul.mubr.bf16.vlgmr.msra.gmra.mrb[4].mxu0 %v307_v47 }
 0x2f2   :  { %v415_v51 = vpop.f32.mrb[4].mxu0 }
 0x2f3   :  { %v416_v52 = vadd.f32 %v580_v50, %v415_v51  ;;  %v692_v53 = vpop.f32.mrb[5].mxu0 }
 0x2f4   :  { %v418_v54 = vpop.f32.mrb[6].mxu0 }
 0x2f5   :  { %v421_v55 = vmax.f32 %v416_v52, 0.0  ;;  %v693_v56 = vpop.f32.mrb[7].mxu0 }
 0x2f7   :  { %v422_v57 = vpack.c.bf16 %v421_v55, %v421_v55 }
 0x2f9   :  { %711 = vmatmul.mubr.bf16.vlgmr.msra.gmra.mrb[4].mxu1 %v422_v57 }
 0x3cc   :  { %v528_v59 = vpop.f32.mrb[4].mxu1 }
 0x3cd   :  { %v529_v60 = vadd.f32 %v589_v58, %v528_v59  ;;  %v712_v61 = vpop.f32.mrb[5].mxu1 }
 0x3ce   :  { %v531_v62 = vpop.f32.mrb[6].mxu1 }
 0x3cf   :  { %534 = vmax.xlane.f32.xlu0 %v529_v60  ;;  %v713_v63 = vpop.f32.mrb[7].mxu1 }
 0x45c   :  { %v535_v0 = vpop.xlane.xlu0 %534 }
 0x45d   :  { %v536_v1 = vsub.f32 %v529_v60, %v535_v0 }
 0x45f   :  { %v537_v2 = vmul.f32 1.442695, %v536_v1 }
 0x461   :  { %755 = vpow2.f32 %v537_v2 }
 0x46b   :  { %v756_v3 = vpop.eup %755 }
 0x46c   :  { %539 = vadd.xlane.f32.xlu0 %v756_v3 }
 0x4f9   :  { %v540_v4 = vpop.xlane.xlu0 %539 }
 0x4fa   :  { %757 = vrcp.f32 %v540_v4 }
 0x504   :  { %v758_v5 = vpop.eup %757 }
 0x505   :  { %v542_v6 = vmul.f32 %v758_v5, %v756_v3 }
 0x507   :  { %543 = vst [vmem:[#allocation10] sm:$0xff] %v542_v6 }
 0x508   :  { %858 = shalt.err (!%p855_p8)
}
 0x509   :  { %s859_s10 = scalar_lea.hbm %s1054_s7, 128 }
 0x50a   :  { %p860_p9 = scmp.ne.s32.totalorder %s1054_s7, %s859_s10  ;;  %p863_p10 = scmp.lt.u32.totalorder %s859_s10, %s1054_s7 }
 0x50c   :  { %p865_p11 = pnand %p863_p10, %p860_p9 }
 0x50e   :  { %868 = shalt.err (!%p865_p11)
}
 0x50f   :  { %553 = dma.vmem_to_hbm [thread:$0]  %s551_s30, 128, %s1054_s7, [#allocation4]  }
 0x510   :  { %875 = dma.done.wait [#allocation4], 128  }
 0x511   :  { %876 = vsyncadd [#allocation4], 4294967168 }
 0x512   :  { %557 = vsyncpa [#allocation3], 1 }
 0x513   :  { %558 = vsyncpa [#allocation6], 1 }
 0x514   :  { %559 = vsyncpa [#allocation9], 1 }
 0x515   :  { %560 = vsyncpa [#allocation4], 1 }

// kernel: tpu_custom_call.1
= control target key start
LH: loop header
LB: loop body
LE: loop exit
PB: predicated region body
PF: predicated region fallthrough
CT: control target
= control target key end

     0   :  { %12 = vsyncpa [#allocation3], 0  ;;  %s1047_s0 = inlined_call_operand.hbm [shape: bf16[8,128], index: 0, kind: input, shape index: {}]   ;;  %s1048_s1 = inlined_call_operand.hbm [shape: bf16[128,128], index: 1, kind: input, shape index: {}]   ;;  %s1049_s2 = inlined_call_operand.vmem [shape: f32[1,128], index: 2, kind: input, shape index: {}]   ;;  %s1050_s3 = inlined_call_operand.hbm [shape: bf16[2,128,128], index: 3, kind: input, shape index: {}]   ;;  %s1051_s4 = inlined_call_operand.vmem [shape: f32[2,1,128], index: 4, kind: input, shape index: {}]   ;;  %s1052_s5 = inlined_call_operand.hbm [shape: bf16[128,128], index: 5, kind: input, shape index: {}]   ;;  %s1053_s6 = inlined_call_operand.vmem [shape: f32[1,128], index: 6, kind: input, shape index: {}]   ;;  %s1054_s7 = inlined_call_operand.hbm [shape: f32[8,128], index: 7, kind: output, shape index: {}]  }
   0x1   :  { %13 = vsyncpa [#allocation6], 0 }
   0x2   :  { %14 = vsyncpa [#allocation9], 0 }
   0x3   :  { %15 = vsyncpa [#allocation4], 0  ;;  %s877_s24 = smov [#allocation5]   ;;  %s759_s28 = scalar_lea.hbm %s1048_s1, 1024 }
   0x4   :  { %s31_s25 = sshll.u32 %s877_s24, 4  ;;  %p760_p0 = scmp.ne.s32.totalorder %s1048_s1, %s759_s28  ;;  %s32_s25 = int_to_ptr.vmem [resolvable:$true] %s31_s25 }
   0x5   :  { %p763_p1 = scmp.lt.u32.totalorder %s759_s28, %s1048_s1 }
   0x7   :  { %p765_p2 = pnand %p763_p1, %p760_p0 }
   0x9   :  { %768 = shalt.err (!%p765_p2)
}
   0xa   :  { %s769_s10 = scalar_lea.vmem %s32_s25, 1024  ;;  %p774_p4 = scmp.lt.s32.totalorder %s32_s25, %s32_s25 }
   0xb   :  { %p770_p3 = scmp.ne.s32.totalorder %s32_s25, %s769_s10  ;;  %p775_p5 = scmp.lt.s32.totalorder %s769_s10, %s769_s10 }
   0xd   :  { %p776_p6 = por %p775_p5, %p774_p4 }
   0xf   :  { %p777_p7 = pnand %p776_p6, %p770_p3 }
  0x11   :  { %780 = shalt.err (!%p777_p7)
}
  0x12   :  { %s878_s11 = smov 64   ;;  %s879_s12 = smov 4  }
  0x13   :  { %37 = dma.hbm_to_vmem [thread:$0]  %s1048_s1, 1024, %s32_s25, [#allocation6], %s878_s11, %s878_s11, %s879_s12  }
  0x14   :  { %s880_s15 = smov [#allocation2]   ;;  %s881_s17 = smov [#allocation7]  }
  0x15   :  { %s22_s16 = sshll.u32 %s880_s15, 4  ;;  %s45_s18 = sshll.u32 %s881_s17, 4  ;;  %s23_s16 = int_to_ptr.vmem [resolvable:$true] %s22_s16  ;;  %s46_s18 = int_to_ptr.vmem [resolvable:$true] %s45_s18 }
  0x16   :  { %s781_s21 = scalar_lea.hbm %s1047_s0, 64 }
  0x17   :  { %p782_p8 = scmp.ne.s32.totalorder %s1047_s0, %s781_s21  ;;  %p785_p9 = scmp.lt.u32.totalorder %s781_s21, %s1047_s0 }
  0x19   :  { %p787_p10 = pnand %p785_p9, %p782_p8 }
  0x1b   :  { %790 = shalt.err (!%p787_p10)
}
  0x1c   :  { %s791_s1 = scalar_lea.vmem %s23_s16, 64  ;;  %p796_p12 = scmp.lt.s32.totalorder %s23_s16, %s23_s16 }
  0x1d   :  { %p792_p11 = scmp.ne.s32.totalorder %s23_s16, %s791_s1  ;;  %p797_p13 = scmp.lt.s32.totalorder %s791_s1, %s791_s1 }
  0x1f   :  { %p798_p0 = por %p797_p13, %p796_p12 }
  0x21   :  { %p799_p1 = pnand %p798_p0, %p792_p11 }
  0x23   :  { %802 = shalt.err (!%p799_p1)
}
  0x24   :  { %25 = dma.hbm_to_vmem [thread:$0]  %s1047_s0, 64, %s23_s16, [#allocation3]  }
  0x25   :  { %s803_s30 = scalar_lea.hbm %s1050_s3, 2048 }
  0x26   :  { %p804_p2 = scmp.ne.s32.totalorder %s1050_s3, %s803_s30  ;;  %p807_p3 = scmp.lt.u32.totalorder %s803_s30, %s1050_s3 }
  0x28   :  { %p809_p4 = pnand %p807_p3, %p804_p2 }
  0x2a   :  { %812 = shalt.err (!%p809_p4)
}
  0x2b   :  { %s813_s14 = scalar_lea.vmem %s46_s18, 2048  ;;  %p818_p6 = scmp.lt.s32.totalorder %s46_s18, %s46_s18 }
  0x2c   :  { %p814_p5 = scmp.ne.s32.totalorder %s46_s18, %s813_s14  ;;  %p819_p7 = scmp.lt.s32.totalorder %s813_s14, %s813_s14 }
  0x2e   :  { %p820_p8 = por %p819_p7, %p818_p6 }
  0x30   :  { %p821_p9 = pnand %p820_p8, %p814_p5 }
  0x32   :  { %824 = shalt.err (!%p821_p9)
}
  0x33   :  { %51 = dma.hbm_to_vmem [thread:$0]  %s1050_s3, 2048, %s46_s18, [#allocation6], %s878_s11, %s878_s11, %s879_s12  }
  0x34   :  { %s882_s16 = smov [#allocation8]   ;;  %s825_s21 = scalar_lea.hbm %s1052_s5, 1024 }
  0x35   :  { %s59_s17 = sshll.u32 %s882_s16, 4  ;;  %p826_p10 = scmp.ne.s32.totalorder %s1052_s5, %s825_s21  ;;  %s60_s17 = int_to_ptr.vmem [resolvable:$true] %s59_s17 }
  0x36   :  { %p829_p11 = scmp.lt.u32.totalorder %s825_s21, %s1052_s5 }
  0x38   :  { %p831_p12 = pnand %p829_p11, %p826_p10 }
  0x3a   :  { %834 = shalt.err (!%p831_p12)
}
  0x3b   :  { %s835_s1 = scalar_lea.vmem %s60_s17, 1024  ;;  %p840_p0 = scmp.lt.s32.totalorder %s60_s17, %s60_s17 }
  0x3c   :  { %p836_p13 = scmp.ne.s32.totalorder %s60_s17, %s835_s1  ;;  %p841_p1 = scmp.lt.s32.totalorder %s835_s1, %s835_s1 }
  0x3e   :  { %p842_p2 = por %p841_p1, %p840_p0 }
  0x40   :  { %p843_p3 = pnand %p842_p2, %p836_p13 }
  0x42   :  { %846 = shalt.err (!%p843_p3)
}
  0x43   :  { %65 = dma.hbm_to_vmem [thread:$0]  %s1052_s5, 1024, %s60_s17, [#allocation9], %s878_s11, %s878_s11, %s879_s12  }
  0x44   :  { %869 = dma.done.wait [#allocation3], 64  }
  0x45   :  { %870 = vsyncadd [#allocation3], 4294967232 }
  0x46   :  { %871 = dma.done.wait [#allocation6], 3072  }
  0x47   :  { %872 = vsyncadd [#allocation6], 4294964224 }
  0x48   :  { %873 = dma.done.wait [#allocation9], 1024  }
  0x49   :  { %874 = vsyncadd [#allocation9], 4294966272  ;;  %v883_v0 = vmov 0.0   ;;  %vm884_vm0 = vmmov 0   ;;  %v723_v1 = vld [vmem:[#allocation5] sm:$0xff]   ;;  %v724_v2 = vld [vmem:[#allocation5 + $0x8] sm:$0xff]  }
  0x4a   :  { %634 = vmatprep.subr.bf16.mxu0 %v883_v0  ;;  %650 = vmatprep.mubr.msk.bf16.mxu0 %vm884_vm0, %v883_v0  ;;  %v725_v3 = vld [vmem:[#allocation5 + $0x10] sm:$0xff]   ;;  %v731_v4 = vld [vmem:[#allocation7] sm:$0xff]   ;;  %v726_v5 = vld [vmem:[#allocation5 + $0x18] sm:$0xff]  }
  0x4b   :  { %654 = vmatprep.subr.bf16.mxu1 %v883_v0  ;;  %670 = vmatprep.mubr.msk.bf16.mxu1 %vm884_vm0, %v883_v0  ;;  %v732_v6 = vld [vmem:[#allocation7 + $0x8] sm:$0xff]   ;;  %v727_v7 = vld [vmem:[#allocation5 + $0x20] sm:$0xff]   ;;  %v733_v8 = vld [vmem:[#allocation7 + $0x10] sm:$0xff]  }
  0x4c   :  { %635 = vmatpush3.bf16.msra.mxu0 %v723_v1  ;;  %655 = vmatpush3.bf16.msra.mxu1 %v731_v4  ;;  %v728_v9 = vld [vmem:[#allocation5 + $0x28] sm:$0xff]   ;;  %v734_v10 = vld [vmem:[#allocation7 + $0x18] sm:$0xff]   ;;  %v729_v11 = vld [vmem:[#allocation5 + $0x30] sm:$0xff]  }
  0x4d   :  { %636 = vmatprep.subr.bf16.mxu0 %v883_v0  ;;  %656 = vmatprep.subr.bf16.mxu1 %v883_v0  ;;  %v735_v12 = vld [vmem:[#allocation7 + $0x20] sm:$0xff]   ;;  %v730_v13 = vld [vmem:[#allocation5 + $0x38] sm:$0xff]   ;;  %v736_v14 = vld [vmem:[#allocation7 + $0x28] sm:$0xff]  }
  0x4e   :  { %v81_v15 = vld [vmem:[#allocation2] sm:$0xf]  ;;  %v737_v16 = vld [vmem:[#allocation7 + $0x30] sm:$0xff]   ;;  %v739_v18 = vld [vmem:[#allocation7 + $0x40] sm:$0xff]  }
  0x4f   :  { %v738_v17 = vld [vmem:[#allocation7 + $0x38] sm:$0xff]   ;;  %v740_v19 = vld [vmem:[#allocation7 + $0x48] sm:$0xff]   ;;  %v741_v20 = vld [vmem:[#allocation7 + $0x50] sm:$0xff]  }
  0x50   :  { %637 = vmatpush3.bf16.msra.mxu0 %v724_v2  ;;  %657 = vmatpush3.bf16.msra.mxu1 %v732_v6  ;;  %v742_v21 = vld [vmem:[#allocation7 + $0x58] sm:$0xff]   ;;  %v743_v22 = vld [vmem:[#allocation7 + $0x60] sm:$0xff]   ;;  %v744_v23 = vld [vmem:[#allocation7 + $0x68] sm:$0xff]  }
  0x51   :  { %638 = vmatprep.subr.bf16.mxu0 %v883_v0  ;;  %658 = vmatprep.subr.bf16.mxu1 %v883_v0  ;;  %v561_v24 = vld [vmem:[%s1049_s2] ss:$0 sm:$0xff]  ;;  %v745_v32 = vld [vmem:[#allocation7 + $0x70] sm:$0xff]   ;;  %v747_v34 = vld [vmem:[#allocation8] sm:$0xff]  }
  0x52   :  { %v746_v33 = vld [vmem:[#allocation7 + $0x78] sm:$0xff]   ;;  %v748_v35 = vld [vmem:[#allocation8 + $0x8] sm:$0xff]   ;;  %v749_v36 = vld [vmem:[#allocation8 + $0x10] sm:$0xff]  }
  0x53   :  { %v750_v37 = vld [vmem:[#allocation8 + $0x18] sm:$0xff]   ;;  %v751_v38 = vld [vmem:[#allocation8 + $0x20] sm:$0xff]   ;;  %v752_v39 = vld [vmem:[#allocation8 + $0x28] sm:$0xff]  }
  0x54   :  { %639 = vmatpush3.bf16.msra.mxu0 %v725_v3  ;;  %659 = vmatpush3.bf16.msra.mxu1 %v733_v8  ;;  %v570_v40 = vld [vmem:[%s1051_s4] ss:$0 sm:$0xff]  ;;  %v753_v48 = vld [vmem:[#allocation8 + $0x30] sm:$0xff]   ;;  %v580_v50 = vld [vmem:[%s1051_s4 + $0x1] ss:$0 sm:$0xff]  ;;  %s885_s4 = smov [#allocation10]  }
  0x55   :  { %640 = vmatprep.subr.bf16.mxu0 %v883_v0  ;;  %660 = vmatprep.subr.bf16.mxu1 %v883_v0  ;;  %v754_v49 = vld [vmem:[#allocation8 + $0x38] sm:$0xff]   ;;  %s550_s30 = sshll.u32 %s885_s4, 4  ;;  %s551_s30 = int_to_ptr.vmem [resolvable:$true] %s550_s30 }
  0x56   :  { %v589_v58 = vld [vmem:[%s1053_s6] ss:$0 sm:$0xff]  ;;  %s847_s6 = scalar_lea.vmem %s551_s30, 128  ;;  %p852_p5 = scmp.lt.s32.totalorder %s551_s30, %s551_s30 }
  0x57   :  { %p848_p4 = scmp.ne.s32.totalorder %s551_s30, %s847_s6  ;;  %p853_p6 = scmp.lt.s32.totalorder %s847_s6, %s847_s6 }
  0x58   :  { %641 = vmatpush3.bf16.msra.mxu0 %v726_v5  ;;  %661 = vmatpush3.bf16.msra.mxu1 %v734_v10 }
  0x59   :  { %642 = vmatprep.subr.bf16.mxu0 %v883_v0  ;;  %662 = vmatprep.subr.bf16.mxu1 %v883_v0  ;;  %p854_p7 = por %p853_p6, %p852_p5 }
  0x5b   :  { %p855_p8 = pnand %p854_p7, %p848_p4 }
  0x5c   :  { %643 = vmatpush3.bf16.msra.mxu0 %v727_v7  ;;  %663 = vmatpush3.bf16.msra.mxu1 %v735_v12 }
  0x5d   :  { %644 = vmatprep.subr.bf16.mxu0 %v883_v0  ;;  %664 = vmatprep.subr.bf16.mxu1 %v883_v0 }
  0x60   :  { %645 = vmatpush3.bf16.msra.mxu0 %v728_v9  ;;  %665 = vmatpush3.bf16.msra.mxu1 %v736_v14 }
  0x61   :  { %646 = vmatprep.subr.bf16.mxu0 %v883_v0  ;;  %666 = vmatprep.subr.bf16.mxu1 %v883_v0 }
  0x64   :  { %647 = vmatpush3.bf16.msra.mxu0 %v729_v11  ;;  %667 = vmatpush3.bf16.msra.mxu1 %v737_v16 }
  0x65   :  { %648 = vmatprep.subr.bf16.mxu0 %v883_v0  ;;  %668 = vmatprep.subr.bf16.mxu1 %v883_v0 }
  0x68   :  { %649 = vmatpush3.bf16.msra.mxu0 %v730_v13  ;;  %669 = vmatpush3.bf16.msra.mxu1 %v738_v17 }
  0x69   :  { %674 = vmatprep.subr.bf16.mxu0 %v883_v0  ;;  %694 = vmatprep.subr.bf16.mxu1 %v883_v0 }
  0x6b   :  { %651 = vmatmul.mubr.bf16.vlgmr.msra.gmra.mrb[0].mxu0 %v81_v15 }
  0x6c   :  { %690 = vmatprep.mubr.msk.bf16.mxu0 %vm884_vm0, %v883_v0  ;;  %675 = vmatpush3.bf16.msra.mxu0 %v739_v18 }
  0x6d   :  { %676 = vmatprep.subr.bf16.mxu0 %v883_v0 }
  0x70   :  { %677 = vmatpush3.bf16.msra.mxu0 %v740_v19 }
  0x71   :  { %678 = vmatprep.subr.bf16.mxu0 %v883_v0 }
  0x74   :  { %679 = vmatpush3.bf16.msra.mxu0 %v741_v20 }
  0x75   :  { %680 = vmatprep.subr.bf16.mxu0 %v883_v0 }
  0x78   :  { %681 = vmatpush3.bf16.msra.mxu0 %v742_v21 }
  0x79   :  { %682 = vmatprep.subr.bf16.mxu0 %v883_v0 }
  0x7c   :  { %683 = vmatpush3.bf16.msra.mxu0 %v743_v22 }
  0x7d   :  { %684 = vmatprep.subr.bf16.mxu0 %v883_v0 }
  0x80   :  { %685 = vmatpush3.bf16.msra.mxu0 %v744_v23 }
  0x81   :  { %686 = vmatprep.subr.bf16.mxu0 %v883_v0 }
  0x84   :  { %687 = vmatpush3.bf16.msra.mxu0 %v745_v32 }
  0x85   :  { %688 = vmatprep.subr.bf16.mxu0 %v883_v0 }
  0x88   :  { %689 = vmatpush3.bf16.msra.mxu0 %v746_v33 }
 0x13e   :  { %v187_v25 = vpop.f32.mrb[0].mxu0 }
 0x13f   :  { %v188_v26 = vadd.f32 %v561_v24, %v187_v25  ;;  %v652_v27 = vpop.f32.mrb[1].mxu0 }
 0x140   :  { %v190_v28 = vpop.f32.mrb[2].mxu0 }
 0x141   :  { %v193_v29 = vmax.f32 %v188_v26, 0.0  ;;  %v653_v30 = vpop.f32.mrb[3].mxu0 }
 0x143   :  { %v194_v31 = vpack.c.bf16 %v193_v29, %v193_v29 }
 0x145   :  { %671 = vmatmul.mubr.bf16.vlgmr.msra.gmra.mrb[0].mxu1 %v194_v31 }
 0x146   :  { %710 = vmatprep.mubr.msk.bf16.mxu1 %vm884_vm0, %v883_v0  ;;  %695 = vmatpush3.bf16.msra.mxu1 %v747_v34 }
 0x147   :  { %696 = vmatprep.subr.bf16.mxu1 %v883_v0 }
 0x14a   :  { %697 = vmatpush3.bf16.msra.mxu1 %v748_v35 }
 0x14b   :  { %698 = vmatprep.subr.bf16.mxu1 %v883_v0 }
 0x14e   :  { %699 = vmatpush3.bf16.msra.mxu1 %v749_v36 }
 0x14f   :  { %700 = vmatprep.subr.bf16.mxu1 %v883_v0 }
 0x152   :  { %701 = vmatpush3.bf16.msra.mxu1 %v750_v37 }
 0x153   :  { %702 = vmatprep.subr.bf16.mxu1 %v883_v0 }
 0x156   :  { %703 = vmatpush3.bf16.msra.mxu1 %v751_v38 }
 0x157   :  { %704 = vmatprep.subr.bf16.mxu1 %v883_v0 }
 0x15a   :  { %705 = vmatpush3.bf16.msra.mxu1 %v752_v39 }
 0x15b   :  { %706 = vmatprep.subr.bf16.mxu1 %v883_v0 }
 0x15e   :  { %707 = vmatpush3.bf16.msra.mxu1 %v753_v48 }
 0x15f   :  { %708 = vmatprep.subr.bf16.mxu1 %v883_v0 }
 0x162   :  { %709 = vmatpush3.bf16.msra.mxu1 %v754_v49 }
 0x218   :  { %v300_v41 = vpop.f32.mrb[0].mxu1 }
 0x219   :  { %v301_v42 = vadd.f32 %v570_v40, %v300_v41  ;;  %v672_v43 = vpop.f32.mrb[1].mxu1 }
 0x21a   :  { %v303_v44 = vpop.f32.mrb[2].mxu1 }
 0x21b   :  { %v306_v45 = vmax.f32 %v301_v42, 0.0  ;;  %v673_v46 = vpop.f32.mrb[3].mxu1 }
 0x21d   :  { %v307_v47 = vpack.c.bf16 %v306_v45, %v306_v45 }
 0x21f   :  { %691 = vmatmul.mubr.bf16.vlgmr.msra.gmra.mrb[4].mxu0 %v307_v47 }
 0x2f2   :  { %v415_v51 = vpop.f32.mrb[4].mxu0 }
 0x2f3   :  { %v416_v52 = vadd.f32 %v580_v50, %v415_v51  ;;  %v692_v53 = vpop.f32.mrb[5].mxu0 }
 0x2f4   :  { %v418_v54 = vpop.f32.mrb[6].mxu0 }
 0x2f5   :  { %v421_v55 = vmax.f32 %v416_v52, 0.0  ;;  %v693_v56 = vpop.f32.mrb[7].mxu0 }
 0x2f7   :  { %v422_v57 = vpack.c.bf16 %v421_v55, %v421_v55 }
 0x2f9   :  { %711 = vmatmul.mubr.bf16.vlgmr.msra.gmra.mrb[4].mxu1 %v422_v57 }
 0x3cc   :  { %v528_v59 = vpop.f32.mrb[4].mxu1 }
 0x3cd   :  { %v529_v60 = vadd.f32 %v589_v58, %v528_v59  ;;  %v712_v61 = vpop.f32.mrb[5].mxu1 }
 0x3ce   :  { %v531_v62 = vpop.f32.mrb[6].mxu1 }
 0x3cf   :  { %534 = vmax.xlane.f32.xlu0 %v529_v60  ;;  %v713_v63 = vpop.f32.mrb[7].mxu1 }
 0x45c   :  { %v535_v0 = vpop.xlane.xlu0 %534 }
 0x45d   :  { %v536_v1 = vsub.f32 %v529_v60, %v535_v0 }
 0x45f   :  { %v537_v2 = vmul.f32 1.442695, %v536_v1 }
 0x461   :  { %755 = vpow2.f32 %v537_v2 }
 0x46b   :  { %v756_v3 = vpop.eup %755 }
 0x46c   :  { %539 = vadd.xlane.f32.xlu0 %v756_v3 }
 0x4f9   :  { %v540_v4 = vpop.xlane.xlu0 %539 }
 0x4fa   :  { %757 = vrcp.f32 %v540_v4 }
 0x504   :  { %v758_v5 = vpop.eup %757 }
 0x505   :  { %v542_v6 = vmul.f32 %v758_v5, %v756_v3 }
 0x507   :  { %543 = vst [vmem:[#allocation10] sm:$0xff] %v542_v6 }
 0x508   :  { %858 = shalt.err (!%p855_p8)
}
 0x509   :  { %s859_s10 = scalar_lea.hbm %s1054_s7, 128 }
 0x50a   :  { %p860_p9 = scmp.ne.s32.totalorder %s1054_s7, %s859_s10  ;;  %p863_p10 = scmp.lt.u32.totalorder %s859_s10, %s1054_s7 }
 0x50c   :  { %p865_p11 = pnand %p863_p10, %p860_p9 }
 0x50e   :  { %868 = shalt.err (!%p865_p11)
}
 0x50f   :  { %553 = dma.vmem_to_hbm [thread:$0]  %s551_s30, 128, %s1054_s7, [#allocation4]  }
 0x510   :  { %875 = dma.done.wait [#allocation4], 128  }
 0x511   :  { %876 = vsyncadd [#allocation4], 4294967168 }
 0x512   :  { %557 = vsyncpa [#allocation3], 1 }
 0x513   :  { %558 = vsyncpa [#allocation6], 1 }
 0x514   :  { %559 = vsyncpa [#allocation9], 1 }
 0x515   :  { %560 = vsyncpa [#allocation4], 1 }

</bundles_post_ra>
